<compile_context>
chip_gen: v5e
topology: v5e:2x2
jax: 0.10.0
libtpu: 0.0.40
codegen_flags: <defaults>
</compile_context>

<pallas_src>
import jax
import jax.numpy as jnp
from jax.experimental import pallas as pl
from jax.experimental.pallas import tpu as pltpu


def _round_up(n, m):
    return pl.cdiv(n, m) * m


def mlp_kernel(x_ref, w1t_ref, b1_ref, w2_ref, b2_ref, o_ref):
    # Layer 1 on the MXU: (tb, In) @ (In, H) -> (tb, H), f32 accumulation.
    h = jnp.dot(x_ref[...], w1t_ref[...], preferred_element_type=jnp.float32)
    h = jnp.maximum(h + b1_ref[...], 0.0)                 # bias + ReLU (VPU), f32

    # Layer 2 (H -> 1): elementwise multiply (VPU) + cross-lane sum (XLU).
    z = jnp.sum(h * w2_ref[...], axis=-1, keepdims=True)  # (tb, 1)
    z = z + b2_ref[0]                                      # scalar bias from SMEM

    # Exact sigmoid: exp on the EUP; the f32 divide lowers via EUP reciprocal.
    o_ref[...] = (1.0 / (1.0 + jnp.exp(-z))).astype(o_ref.dtype)


def neural_net1_forward(x, w1, b1, w2, b2, *, block_batch=1024):
    """Forward of NeuralNet1: sigmoid(relu(x @ w1.T + b1) @ w2.T + b2).

    x  : (B, In)  f32 or bf16 (bf16 halves HBM read bytes; accum/epilogue stay f32)
    w1 : (H, In)  PyTorch nn.Linear layout (out_features, in_features)
    b1 : (H,)
    w2 : (1, H)
    b2 : (1,)
    returns (B, 1) f32
    """
    B, In = x.shape
    H = w1.shape[0]
    op_dtype = x.dtype                           # matmul operand dtype
    itemsize = jnp.dtype(op_dtype).itemsize

    # Tiny one-time weight prep (all VMEM-resident across the whole grid).
    w1_t = jnp.asarray(w1, op_dtype).T                         # (In, H)
    b1_r = jnp.asarray(b1, jnp.float32).reshape(1, H)          # (1, H)
    w2_r = jnp.asarray(w2, jnp.float32).reshape(1, H)          # (1, H)
    b2_s = jnp.asarray(b2, jnp.float32).reshape(1)             # scalar -> SMEM

    # Batch tile: multiple of the sublane granule (16 rows for packed bf16,
    # 8 for f32), large enough to amortize per-grid-step overhead.
    sub = 16 if itemsize == 2 else 8
    tb = max(sub, min(block_batch, _round_up(B, sub)))
    n_blocks = pl.cdiv(B, tb)
    b_pad = n_blocks * tb            # only the (tiny) output is padded, not x

    out = pl.pallas_call(
        mlp_kernel,
        out_shape=jax.ShapeDtypeStruct((b_pad, 1), jnp.float32),
        grid_spec=pltpu.PrefetchScalarGridSpec(
            num_scalar_prefetch=0,
            grid=(n_blocks,),
            in_specs=[
                # x: natural layout, streamed + double-buffered per batch tile.
                pl.BlockSpec((tb, In), lambda i: (i, 0)),
                # Weights / biases: full-array blocks, resident across the grid.
                pl.BlockSpec((In, H), lambda i: (0, 0)),
                pl.BlockSpec((1, H), lambda i: (0, 0)),
                pl.BlockSpec((1, H), lambda i: (0, 0)),
                pl.BlockSpec(memory_space=pltpu.SMEM),    # b2 scalar
            ],
            out_specs=pl.BlockSpec((tb, 1), lambda i: (i, 0)),
        ),
        compiler_params=pltpu.CompilerParams(
            # Batch axis is embarrassingly parallel -> megacore / 2-TC on v7x.
            dimension_semantics=("parallel",),
        ),
        cost_estimate=pl.CostEstimate(
            flops=2 * B * H * (In + 1),
            transcendentals=B,
            bytes_accessed=B * In * itemsize + B * 4
            + In * H * itemsize + (2 * H + 1) * 4,
        ),
    )(x, w1_t, b1_r, w2_r, b2_s)

    return out[:B]


if __name__ == "__main__":
    # NOTE: at these tiny demo shapes the kernel is pure dispatch overhead;
    # the tiling above is what makes it scale to real serving batch sizes.
    input_size, hidden_size = 16, 32

    key = jax.random.PRNGKey(0)
    kx, kw1, kb1, kw2, kb2 = jax.random.split(key, 5)

    # Deterministic params in PyTorch nn.Linear layout (out_features, in_features).
    lim1 = 1.0 / (input_size ** 0.5)
    w1 = jax.random.uniform(kw1, (hidden_size, input_size), jnp.float32, -lim1, lim1)
    b1 = jax.random.uniform(kb1, (hidden_size,), jnp.float32, -lim1, lim1)
    lim2 = 1.0 / (hidden_size ** 0.5)
    w2 = jax.random.uniform(kw2, (1, hidden_size), jnp.float32, -lim2, lim2)
    b2 = jax.random.uniform(kb2, (1,), jnp.float32, -lim2, lim2)

    def reference(xv):
        return jax.nn.sigmoid(jnp.maximum(xv @ w1.T + b1, 0.0) @ w2.T + b2)

    # f32 path.
    x32 = jax.random.normal(kx, (8, input_size), dtype=jnp.float32)
    y32 = jax.block_until_ready(neural_net1_forward(x32, w1, b1, w2, b2))
    assert y32.shape == (8, 1)
    assert jnp.allclose(y32, reference(x32), atol=1e-4, rtol=1e-4), "f32 mismatch"

    # bf16-operand path (halves HBM read bytes for x; f32 accumulate + epilogue).
    xb = jax.random.normal(kx, (32, input_size), dtype=jnp.float32)
    yb = jax.block_until_ready(
        neural_net1_forward(xb.astype(jnp.bfloat16), w1, b1, w2, b2))
    assert yb.shape == (32, 1)
    assert jnp.allclose(yb, reference(xb), atol=2e-2, rtol=2e-2), "bf16 mismatch"

    print("KERNEL_OK")
</pallas_src>

<mosaic_0001>
module attributes {stable_mosaic.version = 11 : i64} {
  func.func @mlp_kernel(%arg0: i32, %arg1: memref<8x16xf32, #tpu.memory_space<vmem>>, %arg2: memref<16x32xf32, #tpu.memory_space<vmem>>, %arg3: memref<1x32xf32, #tpu.memory_space<vmem>>, %arg4: memref<1x32xf32, #tpu.memory_space<vmem>>, %arg5: memref<1xf32, #tpu.memory_space<smem>>, %arg6: memref<8x1xf32, #tpu.memory_space<vmem>>) attributes {dimension_semantics = [#tpu.dimension_semantics<parallel>], iteration_bounds = array<i64: 1>, scalar_prefetch = 0 : i64, scratch_operands = 0 : i64, tpu.core_type = #tpu.core_type<tc>, window_params = [{transform_indices = @transform_0, window_bounds = array<i64: 8, 16>}, {pipeline_mode = #tpu.pipeline_mode<synchronous>, transform_indices = @transform_1, window_bounds = array<i64: 16, 32>}, {pipeline_mode = #tpu.pipeline_mode<synchronous>, transform_indices = @transform_2, window_bounds = array<i64: 1, 32>}, {pipeline_mode = #tpu.pipeline_mode<synchronous>, transform_indices = @transform_3, window_bounds = array<i64: 1, 32>}, {transform_indices = @transform_4, window_bounds = array<i64: 1>}, {transform_indices = @transform_5, window_bounds = array<i64: 8, 1>}]} {
    %c0 = arith.constant 0 : index
    %c0_0 = arith.constant 0 : index
    %0 = vector.load %arg1[%c0, %c0_0] : memref<8x16xf32, #tpu.memory_space<vmem>>, vector<8x16xf32>
    %c0_1 = arith.constant 0 : index
    %c0_2 = arith.constant 0 : index
    %1 = vector.load %arg2[%c0_1, %c0_2] : memref<16x32xf32, #tpu.memory_space<vmem>>, vector<16x32xf32>
    %cst = arith.constant dense<0.000000e+00> : vector<8x32xf32>
    %2 = tpu.matmul %0, %1, %cst {dimension_numbers = #tpu.dot_dimension_numbers<[1], [0], [0], [1], [0, 0, 1, 1], [], []>} : vector<8x16xf32>, vector<16x32xf32>, vector<8x32xf32> -> vector<8x32xf32>
    %c0_3 = arith.constant 0 : index
    %c0_4 = arith.constant 0 : index
    %3 = vector.load %arg3[%c0_3, %c0_4] : memref<1x32xf32, #tpu.memory_space<vmem>>, vector<1x32xf32>
    %4 = vector.broadcast %3 : vector<1x32xf32> to vector<8x32xf32>
    %5 = arith.addf %2, %4 : vector<8x32xf32>
    %cst_5 = arith.constant 0.000000e+00 : f32
    %6 = vector.broadcast %cst_5 : f32 to vector<8x32xf32>
    %7 = arith.maximumf %5, %6 : vector<8x32xf32>
    %c0_6 = arith.constant 0 : index
    %c0_7 = arith.constant 0 : index
    %8 = vector.load %arg4[%c0_6, %c0_7] : memref<1x32xf32, #tpu.memory_space<vmem>>, vector<1x32xf32>
    %9 = vector.broadcast %8 : vector<1x32xf32> to vector<8x32xf32>
    %10 = arith.mulf %7, %9 : vector<8x32xf32>
    %cst_8 = arith.constant dense<0.000000e+00> : vector<8xf32>
    %11 = vector.multi_reduction <add>, %10, %cst_8 [1] : vector<8x32xf32> to vector<8xf32>
    %12 = vector.shape_cast %11 : vector<8xf32> to vector<8x1xf32>
    %c0_9 = arith.constant 0 : index
    %13 = memref.load %arg5[%c0_9] : memref<1xf32, #tpu.memory_space<smem>>
    %14 = vector.broadcast %13 : f32 to vector<8x1xf32>
    %15 = arith.addf %12, %14 : vector<8x1xf32>
    %cst_10 = arith.constant 0.000000e+00 : f32
    %16 = vector.broadcast %cst_10 : f32 to vector<8x1xf32>
    %17 = arith.subf %16, %15 : vector<8x1xf32>
    %18 = math.exp %17 : vector<8x1xf32>
    %cst_11 = arith.constant 1.000000e+00 : f32
    %19 = vector.broadcast %cst_11 : f32 to vector<8x1xf32>
    %20 = arith.addf %19, %18 : vector<8x1xf32>
    %cst_12 = arith.constant 1.000000e+00 : f32
    %21 = vector.broadcast %cst_12 : f32 to vector<8x1xf32>
    %22 = arith.divf %21, %20 : vector<8x1xf32>
    %c0_13 = arith.constant 0 : index
    %c0_14 = arith.constant 0 : index
    %23 = vector.load %arg6[%c0_13, %c0_14] : memref<8x1xf32, #tpu.memory_space<vmem>>, vector<8x1xf32>
    tpu.vector_store %arg6[%c0_13, %c0_14], %22 {strides = array<i32>} : memref<8x1xf32, #tpu.memory_space<vmem>>, vector<8x1xf32>,
    return
  }
  func.func @transform_0(%arg0: i32) -> (i32, i32) {
    %c0_i32 = arith.constant 0 : i32
    %c0_i32_0 = arith.constant 0 : i32
    return %arg0, %c0_i32 : i32, i32
  }
  func.func @transform_1(%arg0: i32) -> (i32, i32) {
    %c0_i32 = arith.constant 0 : i32
    %c0_i32_0 = arith.constant 0 : i32
    %c0_i32_1 = arith.constant 0 : i32
    return %c0_i32, %c0_i32_0 : i32, i32
  }
  func.func @transform_2(%arg0: i32) -> (i32, i32) {
    %c0_i32 = arith.constant 0 : i32
    %c0_i32_0 = arith.constant 0 : i32
    %c0_i32_1 = arith.constant 0 : i32
    return %c0_i32, %c0_i32_0 : i32, i32
  }
  func.func @transform_3(%arg0: i32) -> (i32, i32) {
    %c0_i32 = arith.constant 0 : i32
    %c0_i32_0 = arith.constant 0 : i32
    %c0_i32_1 = arith.constant 0 : i32
    return %c0_i32, %c0_i32_0 : i32, i32
  }
  func.func @transform_4(%arg0: i32) -> i32 {
    %c0_i32 = arith.constant 0 : i32
    %c0_i32_0 = arith.constant 0 : i32
    return %c0_i32 : i32
  }
  func.func @transform_5(%arg0: i32) -> (i32, i32) {
    %c0_i32 = arith.constant 0 : i32
    %c0_i32_0 = arith.constant 0 : i32
    return %arg0, %c0_i32 : i32, i32
  }
}

</mosaic_0001>

<bundles_post_ra>
// kernel: tpu_custom_call.1
= control target key start
LH: loop header
LB: loop body
LE: loop exit
PB: predicated region body
PF: predicated region fallthrough
CT: control target
= control target key end

     0   :  { %11 = vsyncpa [#allocation4], 0  ;;  %s237_s0 = inlined_call_operand.hbm [shape: f32[8,16], index: 0, kind: input, shape index: {}]   ;;  %s238_s1 = inlined_call_operand.hbm [shape: f32[16,32], index: 1, kind: input, shape index: {}]   ;;  %s239_s2 = inlined_call_operand.vmem [shape: f32[1,32], index: 2, kind: input, shape index: {}]   ;;  %s240_s3 = inlined_call_operand.vmem [shape: f32[1,32], index: 3, kind: input, shape index: {}]   ;;  %s241_s4 = inlined_call_operand.<no memory space> [shape: f32[1], index: 4, kind: input, shape index: {}]   ;;  %s242_s5 = inlined_call_operand.vmem [shape: f32[8,1], index: 5, kind: output, shape index: {}]  }
   0x1   :  { %s18_s20 = sshll.u32 %s237_s0, 4  ;;  %s19_s20 = int_to_ptr.hbm [resolvable:$true] %s18_s20 }
   0x2   :  { %12 = vsyncpa [#allocation6], 0  ;;  %s185_s21 = smov [#allocation3]   ;;  %s28_s25 = sshll.u32 %s238_s1, 4  ;;  %s29_s25 = int_to_ptr.hbm [resolvable:$true] %s28_s25 }
   0x3   :  { %s20_s22 = sshll.u32 %s185_s21, 4  ;;  %s186_s26 = smov [#allocation5]   ;;  %s21_s22 = int_to_ptr.vmem [resolvable:$true] %s20_s22 }
   0x4   :  { %23 = dma.hbm_to_vmem [thread:$0]  %s19_s20, 128, %s21_s22, [#allocation4]  }
   0x5   :  { %s30_s27 = sshll.u32 %s186_s26, 4  ;;  %s187_s28 = smov 128   ;;  %s31_s27 = int_to_ptr.vmem [resolvable:$true] %s30_s27 }
   0x6   :  { %s188_s29 = smov 8  }
   0x7   :  { %36 = dma.hbm_to_vmem [thread:$0]  %s29_s25, 256, %s31_s27, [#allocation6], %s187_s28, %s187_s28, %s188_s29  }
   0x8   :  { %181 = dma.done.wait [#allocation4], 128  }
   0x9   :  { %182 = vsyncadd [#allocation4], 4294967168 }
   0xa   :  { %183 = dma.done.wait [#allocation6], 256  }
   0xb   :  { %184 = vsyncadd [#allocation6], 4294967040  ;;  %v53_v0 = vld [vmem:[#allocation5 + $0x8] sm:$0xff]  ;;  %v52_v1 = vld [vmem:[#allocation5] sm:$0xff]  ;;  %vm58_vm0 = vcmask 130048   ;;  %vm88_vm1 = vcmask 261120   ;;  %v93_v10 = vstv %s241_s4 }
   0xc   :  { %76 = vmatpush.msra.mxu0 %v53_v0  ;;  %v51_v2 = vld [vmem:[#allocation3] sm:$0xff]  ;;  %vm114_vm5 = vcmask 7168  }
   0xd   :  { %v127_v3 = vld [vmem:[%s239_s2] ss:$0 sm:$0xff] }
   0xe   :  { %77 = vmatpush.msra.mxu0 %v52_v1  ;;  %v128_v6 = vld [vmem:[%s240_s3] ss:$0 sm:$0xff] }
   0xf   :  { %122 = vmatmul.msk.f32.vlgmr.msra.gmra.mxu0 %vm58_vm0, %v51_v2 }
  0x8c   :  { %v79_v4 = vpop.f32.mrf.mxu0 }
  0x8d   :  { %v80_v5 = vadd.f32 %v127_v3, %v79_v4 }
  0x8f   :  { %v82_v7 = vmax.f32 %v80_v5, 0.0 }
  0x91   :  { %v87_v8 = vmul.f32 %v128_v6, %v82_v7 }
  0x93   :  { %v89_v9 = vsel %vm88_vm1, %v87_v8, 0.0 }
  0x94   :  { %90 = vadd.xlane.f32.xlu0 %v89_v9 }
 0x107   :  { %v91_v11 = vpop.xlane.xlu0 %90 }
 0x108   :  { %v94_v12 = vadd.f32 %v93_v10, %v91_v11 }
 0x10a   :  { %v95_v13 = vsub.f32 0.0, %v94_v12 }
 0x10c   :  { %v96_v14 = vmul.f32 1.442695, %v95_v13 }
 0x10e   :  { %129 = vpow2.f32 %v96_v14 }
 0x114   :  { %v130_v15 = vpop.eup %129 }
 0x115   :  { %v98_v16 = vadd.f32 1.0, %v130_v15 }
 0x117   :  { %131 = vrcp.f32 %v98_v16  ;;  %v110_v20 = vand.u32 2147483648, %v98_v16  ;;  %v108_v22 = vand.u32 2147483647, %v98_v16  ;;  %vm104_vm3 = vweird.f32 %v98_v16 }
 0x119   :  { %v111_v24 = vor.u32 1.1754944e-38, %v110_v20  ;;  %vm109_vm6 = vcmp.eq.f32.partialorder %v108_v22, 8.507059e+37 }
 0x11d   :  { %v132_v17 = vpop.eup %131 }
 0x11e   :  { %v100_v18 = vmul.f32 %v132_v17, %v98_v16  ;;  %vm105_vm2 = vweird.f32 %v132_v17 }
 0x11f   :  { %vm106_vm4 = vmor %vm104_vm3, %vm105_vm2 }
 0x120   :  { %v101_v19 = vsub.f32 1.0, %v100_v18 }
 0x122   :  { %v102_v21 = vmul.f32 %v132_v17, %v101_v19 }
 0x124   :  { %v103_v23 = vadd.f32 %v132_v17, %v102_v21 }
 0x126   :  { %v107_v25 = vsel %vm106_vm4, %v132_v17, %v103_v23 }
 0x127   :  { %v112_v26 = vsel %vm109_vm6, %v111_v24, %v107_v25 }
 0x128   :  { %115 = vst.msk [vmem:[%s242_s5] sm:$0xff] %vm114_vm5, %v112_v26 }
 0x129   :  { %120 = vsyncpa [#allocation4], 1 }
 0x12a   :  { %121 = vsyncpa [#allocation6], 1 }

</bundles_post_ra>
